<compile_context>
chip_gen: v7x
topology: tpu7x:2x2x1
jax: 0.10.0
libtpu: 0.0.40
codegen_flags: <defaults>
</compile_context>

<pallas_src>
import functools
import math

import jax
import jax.numpy as jnp
from jax.experimental import pallas as pl
from jax.experimental.pallas import tpu as pltpu


def _round_up(x, m):
    return ((x + m - 1) // m) * m


def _maybe_pad2d(a, rows, cols):
    if rows == 0 and cols == 0:
        return a
    return jnp.pad(a, ((0, rows), (0, cols)))


def _ff_kernel(x_ref, gamma_ref, beta_ref, w1_ref, b1_ref, w2_ref, b2_ref,
               o_ref, *, eps, dim, compute_dtype):
    # x_ref: (tm, dim_p) tile of tokens; feature padding columns are zero.
    x = x_ref[...].astype(jnp.float32)
    dim_p = x.shape[-1]
    inv_dim = 1.0 / dim

    # --- LayerNorm over the *real* `dim` columns.  Padding columns are zero,
    #     so the raw sum only picks up real data; the variance uses a masked
    #     centered value so the (x - mean) in padding columns does not leak. ---
    mean = jnp.sum(x, axis=-1, keepdims=True) * inv_dim
    if dim == dim_p:
        centered = x - mean
    else:
        col = jax.lax.broadcasted_iota(jnp.int32, (1, dim_p), 1)
        centered = jnp.where(col < dim, x - mean, 0.0)
    var = jnp.sum(centered * centered, axis=-1, keepdims=True) * inv_dim
    xn = centered * jax.lax.rsqrt(var + eps)
    xn = xn * gamma_ref[...] + beta_ref[...]   # padded gamma/beta are zero

    # --- Linear(dim -> hidden): bf16 operands, f32 accumulation on the MXU ---
    h = jnp.dot(xn.astype(compute_dtype), w1_ref[...],
                preferred_element_type=jnp.float32)
    h = h + b1_ref[...]

    # --- exact (erf-based) GELU, matching torch.nn.GELU() default, in f32 ---
    h = 0.5 * h * (1.0 + jax.lax.erf(h * (1.0 / math.sqrt(2.0))))

    # --- Linear(hidden -> dim): bf16 operands, f32 accumulation on the MXU ---
    y = jnp.dot(h.astype(compute_dtype), w2_ref[...],
                preferred_element_type=jnp.float32)
    y = y + b2_ref[...]

    o_ref[...] = y.astype(o_ref.dtype)


def _vmem_estimate(tm, dim_p, hid_p, io_bytes, w_bytes):
    """Rough VMEM footprint (double-buffered pipeline blocks + intermediates)."""
    dbl = 2
    tiles = dbl * (tm * dim_p * io_bytes + tm * dim_p * io_bytes)        # x, out
    weights = dbl * (dim_p * hid_p + hid_p * dim_p) * w_bytes            # W1, W2
    vecs = dbl * (3 * dim_p + hid_p) * 4                                 # gamma/beta/b1/b2
    inter = (tm * hid_p * 4 + tm * dim_p * 4                             # f32 h, y
             + tm * hid_p * w_bytes + tm * dim_p * w_bytes)              # bf16 casts
    return tiles + weights + vecs + inter


def feedforward_pallas(x, gamma, beta, w1, b1, w2, b2, *,
                       eps=1e-5, tm=512, compute_dtype=jnp.bfloat16):
    """x: (B, N, dim). Returns (B, N, dim)."""
    B, N, dim = x.shape
    hidden = w1.shape[1]
    M = B * N

    # Lane-dense feature dims (multiples of 128) and a large token tile.
    dim_p = max(128, _round_up(dim, 128))
    hid_p = max(128, _round_up(hidden, 128))

    io_bytes = x.dtype.itemsize
    w_bytes = jnp.dtype(compute_dtype).itemsize

    tm = min(tm, _round_up(M, 8))
    budget = 48 * 1024 * 1024           # leaves headroom on v7x's 64 MiB VMEM
    while tm > 8 and _vmem_estimate(tm, dim_p, hid_p, io_bytes, w_bytes) > budget:
        tm //= 2
    tm = max(8, (tm // 8) * 8)
    M_p = _round_up(M, tm)

    vmem_limit = int(min(96 * 1024 * 1024,
                         max(32 * 1024 * 1024,
                             2 * _vmem_estimate(tm, dim_p, hid_p,
                                                io_bytes, w_bytes))))

    # Zero-pad tokens to M_p and features to lane-dense widths.
    x2d = _maybe_pad2d(x.reshape(M, dim), M_p - M, dim_p - dim)
    gamma2d = jnp.pad(gamma.astype(jnp.float32), (0, dim_p - dim)).reshape(1, dim_p)
    beta2d = jnp.pad(beta.astype(jnp.float32), (0, dim_p - dim)).reshape(1, dim_p)
    w1_p = _maybe_pad2d(w1, dim_p - dim, hid_p - hidden).astype(compute_dtype)
    b1_2d = jnp.pad(b1.astype(jnp.float32), (0, hid_p - hidden)).reshape(1, hid_p)
    w2_p = _maybe_pad2d(w2, hid_p - hidden, dim_p - dim).astype(compute_dtype)
    b2_2d = jnp.pad(b2.astype(jnp.float32), (0, dim_p - dim)).reshape(1, dim_p)

    kernel = functools.partial(_ff_kernel, eps=eps, dim=dim,
                               compute_dtype=compute_dtype)

    cost = pl.CostEstimate(
        flops=4 * M_p * dim_p * hid_p,
        transcendentals=M_p * hid_p,
        bytes_accessed=(x2d.size * io_bytes
                        + M_p * dim_p * io_bytes
                        + w1_p.size * w_bytes
                        + w2_p.size * w_bytes))

    out = pl.pallas_call(
        kernel,
        out_shape=jax.ShapeDtypeStruct((M_p, dim_p), x.dtype),
        grid_spec=pltpu.PrefetchScalarGridSpec(
            num_scalar_prefetch=0,
            grid=(M_p // tm,),
            in_specs=[
                pl.BlockSpec((tm, dim_p), lambda i: (i, 0)),       # x tile (streamed)
                pl.BlockSpec((1, dim_p), lambda i: (0, 0)),        # ln gamma (resident)
                pl.BlockSpec((1, dim_p), lambda i: (0, 0)),        # ln beta  (resident)
                pl.BlockSpec((dim_p, hid_p), lambda i: (0, 0)),    # W1 (resident)
                pl.BlockSpec((1, hid_p), lambda i: (0, 0)),        # b1 (resident)
                pl.BlockSpec((hid_p, dim_p), lambda i: (0, 0)),    # W2 (resident)
                pl.BlockSpec((1, dim_p), lambda i: (0, 0)),        # b2 (resident)
            ],
            out_specs=pl.BlockSpec((tm, dim_p), lambda i: (i, 0)),
        ),
        compiler_params=pltpu.CompilerParams(
            dimension_semantics=("parallel",),
            vmem_limit_bytes=vmem_limit),
        cost_estimate=cost,
    )(x2d, gamma2d, beta2d, w1_p, b1_2d, w2_p, b2_2d)

    return out[:M, :dim].reshape(B, N, dim)


def _reference(x, gamma, beta, w1, b1, w2, b2, eps=1e-5):
    mean = jnp.mean(x, axis=-1, keepdims=True)
    var = jnp.mean(jnp.square(x - mean), axis=-1, keepdims=True)
    xn = (x - mean) / jnp.sqrt(var + eps) * gamma + beta
    h = xn @ w1 + b1
    h = 0.5 * h * (1.0 + jax.lax.erf(h / jnp.sqrt(2.0)))
    return h @ w2 + b2


if __name__ == "__main__":
    # Small shapes consistent with the module: tokens of width `dim`.
    batch, seq, dim, hidden_dim = 2, 8, 32, 64

    key = jax.random.PRNGKey(0)
    kx, kw1, kb1, kw2, kb2 = jax.random.split(key, 5)

    x = jax.random.normal(kx, (batch, seq, dim), dtype=jnp.float32)

    # Deterministic parameter init (PyTorch-like ranges; not a checkpoint load).
    gamma = jnp.ones((dim,), jnp.float32)          # nn.LayerNorm weight init
    beta = jnp.zeros((dim,), jnp.float32)          # nn.LayerNorm bias init
    lim1 = 1.0 / math.sqrt(dim)
    w1 = jax.random.uniform(kw1, (dim, hidden_dim), jnp.float32, -lim1, lim1)
    b1 = jax.random.uniform(kb1, (hidden_dim,), jnp.float32, -lim1, lim1)
    lim2 = 1.0 / math.sqrt(hidden_dim)
    w2 = jax.random.uniform(kw2, (hidden_dim, dim), jnp.float32, -lim2, lim2)
    b2 = jax.random.uniform(kb2, (dim,), jnp.float32, -lim2, lim2)

    out = feedforward_pallas(x, gamma, beta, w1, b1, w2, b2)
    out = jax.block_until_ready(out)

    ref = _reference(x, gamma, beta, w1, b1, w2, b2)
    assert out.shape == (batch, seq, dim)
    # bf16 MXU operands with f32 accumulation: compare against the f32 reference
    # with a tolerance that covers bf16 input rounding (~0.4% relative).
    assert jnp.allclose(out, ref, atol=2e-2, rtol=2e-2), "mismatch vs reference"

    print("KERNEL_OK")
</pallas_src>

<mosaic_0001>
module attributes {stable_mosaic.version = 11 : i64} {
  func.func @_ff_kernel(%arg0: i32, %arg1: memref<16x128xf32, #tpu.memory_space<vmem>>, %arg2: memref<1x128xf32, #tpu.memory_space<vmem>>, %arg3: memref<1x128xf32, #tpu.memory_space<vmem>>, %arg4: memref<128x128xbf16, #tpu.memory_space<vmem>>, %arg5: memref<1x128xf32, #tpu.memory_space<vmem>>, %arg6: memref<128x128xbf16, #tpu.memory_space<vmem>>, %arg7: memref<1x128xf32, #tpu.memory_space<vmem>>, %arg8: memref<16x128xf32, #tpu.memory_space<vmem>>) attributes {dimension_semantics = [#tpu.dimension_semantics<parallel>], iteration_bounds = array<i64: 1>, scalar_prefetch = 0 : i64, scratch_operands = 0 : i64, tpu.core_type = #tpu.core_type<tc>, window_params = [{transform_indices = @transform_0, window_bounds = array<i64: 16, 128>}, {pipeline_mode = #tpu.pipeline_mode<synchronous>, transform_indices = @transform_1, window_bounds = array<i64: 1, 128>}, {pipeline_mode = #tpu.pipeline_mode<synchronous>, transform_indices = @transform_2, window_bounds = array<i64: 1, 128>}, {pipeline_mode = #tpu.pipeline_mode<synchronous>, transform_indices = @transform_3, window_bounds = array<i64: 128, 128>}, {pipeline_mode = #tpu.pipeline_mode<synchronous>, transform_indices = @transform_4, window_bounds = array<i64: 1, 128>}, {pipeline_mode = #tpu.pipeline_mode<synchronous>, transform_indices = @transform_5, window_bounds = array<i64: 128, 128>}, {pipeline_mode = #tpu.pipeline_mode<synchronous>, transform_indices = @transform_6, window_bounds = array<i64: 1, 128>}, {transform_indices = @transform_7, window_bounds = array<i64: 16, 128>}]} {
    %c0 = arith.constant 0 : index
    %c0_0 = arith.constant 0 : index
    %0 = vector.load %arg1[%c0, %c0_0] : memref<16x128xf32, #tpu.memory_space<vmem>>, vector<16x128xf32>
    %cst = arith.constant dense<0.000000e+00> : vector<16xf32>
    %1 = vector.multi_reduction <add>, %0, %cst [1] : vector<16x128xf32> to vector<16xf32>
    %2 = vector.shape_cast %1 : vector<16xf32> to vector<16x1xf32>
    %cst_1 = arith.constant 3.125000e-02 : f32
    %3 = vector.broadcast %cst_1 : f32 to vector<16x1xf32>
    %4 = arith.mulf %2, %3 : vector<16x1xf32>
    %5 = tpu.iota {dimensions = array<i32: 1>} : vector<1x128xi32>
    %c32_i32 = arith.constant 32 : i32
    %6 = vector.broadcast %c32_i32 : i32 to vector<1x128xi32>
    %7 = arith.cmpi slt, %5, %6 : vector<1x128xi32>
    %8 = vector.broadcast %4 : vector<16x1xf32> to vector<16x128xf32>
    %9 = arith.subf %0, %8 : vector<16x128xf32>
    %cst_2 = arith.constant 0.000000e+00 : f32
    %10 = vector.shape_cast %7 : vector<1x128xi1> to vector<1x128xi1>
    %11 = vector.broadcast %10 : vector<1x128xi1> to vector<16x128xi1>
    %12 = vector.broadcast %cst_2 : f32 to vector<16x128xf32>
    %13 = arith.select %11, %9, %12 : vector<16x128xi1>, vector<16x128xf32>
    %14 = arith.mulf %13, %13 : vector<16x128xf32>
    %cst_3 = arith.constant dense<0.000000e+00> : vector<16xf32>
    %15 = vector.multi_reduction <add>, %14, %cst_3 [1] : vector<16x128xf32> to vector<16xf32>
    %16 = vector.shape_cast %15 : vector<16xf32> to vector<16x1xf32>
    %cst_4 = arith.constant 3.125000e-02 : f32
    %17 = vector.broadcast %cst_4 : f32 to vector<16x1xf32>
    %18 = arith.mulf %16, %17 : vector<16x1xf32>
    %cst_5 = arith.constant 9.99999974E-6 : f32
    %19 = vector.broadcast %cst_5 : f32 to vector<16x1xf32>
    %20 = arith.addf %18, %19 : vector<16x1xf32>
    %21 = math.rsqrt %20 : vector<16x1xf32>
    %22 = vector.broadcast %21 : vector<16x1xf32> to vector<16x128xf32>
    %23 = arith.mulf %13, %22 : vector<16x128xf32>
    %c0_6 = arith.constant 0 : index
    %c0_7 = arith.constant 0 : index
    %24 = vector.load %arg2[%c0_6, %c0_7] : memref<1x128xf32, #tpu.memory_space<vmem>>, vector<1x128xf32>
    %25 = vector.broadcast %24 : vector<1x128xf32> to vector<16x128xf32>
    %26 = arith.mulf %23, %25 : vector<16x128xf32>
    %c0_8 = arith.constant 0 : index
    %c0_9 = arith.constant 0 : index
    %27 = vector.load %arg3[%c0_8, %c0_9] : memref<1x128xf32, #tpu.memory_space<vmem>>, vector<1x128xf32>
    %28 = vector.broadcast %27 : vector<1x128xf32> to vector<16x128xf32>
    %29 = arith.addf %26, %28 : vector<16x128xf32>
    %30 = arith.truncf %29 : vector<16x128xf32> to vector<16x128xbf16>
    %c0_10 = arith.constant 0 : index
    %c0_11 = arith.constant 0 : index
    %31 = vector.load %arg4[%c0_10, %c0_11] : memref<128x128xbf16, #tpu.memory_space<vmem>>, vector<128x128xbf16>
    %cst_12 = arith.constant dense<0.000000e+00> : vector<16x128xf32>
    %32 = tpu.matmul %30, %31, %cst_12 {dimension_numbers = #tpu.dot_dimension_numbers<[1], [0], [0], [1], [0, 0, 1, 1], [], []>} : vector<16x128xbf16>, vector<128x128xbf16>, vector<16x128xf32> -> vector<16x128xf32>
    %c0_13 = arith.constant 0 : index
    %c0_14 = arith.constant 0 : index
    %33 = vector.load %arg5[%c0_13, %c0_14] : memref<1x128xf32, #tpu.memory_space<vmem>>, vector<1x128xf32>
    %34 = vector.broadcast %33 : vector<1x128xf32> to vector<16x128xf32>
    %35 = arith.addf %32, %34 : vector<16x128xf32>
    %cst_15 = arith.constant 5.000000e-01 : f32
    %36 = vector.broadcast %cst_15 : f32 to vector<16x128xf32>
    %37 = arith.mulf %36, %35 : vector<16x128xf32>
    %cst_16 = arith.constant 0.707106769 : f32
    %38 = vector.broadcast %cst_16 : f32 to vector<16x128xf32>
    %39 = arith.mulf %35, %38 : vector<16x128xf32>
    %40 = math.erf %39 : vector<16x128xf32>
    %cst_17 = arith.constant 1.000000e+00 : f32
    %41 = vector.broadcast %cst_17 : f32 to vector<16x128xf32>
    %42 = arith.addf %41, %40 : vector<16x128xf32>
    %43 = arith.mulf %37, %42 : vector<16x128xf32>
    %44 = arith.truncf %43 : vector<16x128xf32> to vector<16x128xbf16>
    %c0_18 = arith.constant 0 : index
    %c0_19 = arith.constant 0 : index
    %45 = vector.load %arg6[%c0_18, %c0_19] : memref<128x128xbf16, #tpu.memory_space<vmem>>, vector<128x128xbf16>
    %cst_20 = arith.constant dense<0.000000e+00> : vector<16x128xf32>
    %46 = tpu.matmul %44, %45, %cst_20 {dimension_numbers = #tpu.dot_dimension_numbers<[1], [0], [0], [1], [0, 0, 1, 1], [], []>} : vector<16x128xbf16>, vector<128x128xbf16>, vector<16x128xf32> -> vector<16x128xf32>
    %c0_21 = arith.constant 0 : index
    %c0_22 = arith.constant 0 : index
    %47 = vector.load %arg7[%c0_21, %c0_22] : memref<1x128xf32, #tpu.memory_space<vmem>>, vector<1x128xf32>
    %48 = vector.broadcast %47 : vector<1x128xf32> to vector<16x128xf32>
    %49 = arith.addf %46, %48 : vector<16x128xf32>
    %c0_23 = arith.constant 0 : index
    %c0_24 = arith.constant 0 : index
    %50 = vector.load %arg8[%c0_23, %c0_24] : memref<16x128xf32, #tpu.memory_space<vmem>>, vector<16x128xf32>
    tpu.vector_store %arg8[%c0_23, %c0_24], %49 {strides = array<i32>} : memref<16x128xf32, #tpu.memory_space<vmem>>, vector<16x128xf32>,
    return
  }
  func.func @transform_0(%arg0: i32) -> (i32, i32) {
    %c0_i32 = arith.constant 0 : i32
    %c0_i32_0 = arith.constant 0 : i32
    return %arg0, %c0_i32 : i32, i32
  }
  func.func @transform_1(%arg0: i32) -> (i32, i32) {
    %c0_i32 = arith.constant 0 : i32
    %c0_i32_0 = arith.constant 0 : i32
    %c0_i32_1 = arith.constant 0 : i32
    return %c0_i32, %c0_i32_0 : i32, i32
  }
  func.func @transform_2(%arg0: i32) -> (i32, i32) {
    %c0_i32 = arith.constant 0 : i32
    %c0_i32_0 = arith.constant 0 : i32
    %c0_i32_1 = arith.constant 0 : i32
    return %c0_i32, %c0_i32_0 : i32, i32
  }
  func.func @transform_3(%arg0: i32) -> (i32, i32) {
    %c0_i32 = arith.constant 0 : i32
    %c0_i32_0 = arith.constant 0 : i32
    %c0_i32_1 = arith.constant 0 : i32
    return %c0_i32, %c0_i32_0 : i32, i32
  }
  func.func @transform_4(%arg0: i32) -> (i32, i32) {
    %c0_i32 = arith.constant 0 : i32
    %c0_i32_0 = arith.constant 0 : i32
    %c0_i32_1 = arith.constant 0 : i32
    return %c0_i32, %c0_i32_0 : i32, i32
  }
  func.func @transform_5(%arg0: i32) -> (i32, i32) {
    %c0_i32 = arith.constant 0 : i32
    %c0_i32_0 = arith.constant 0 : i32
    %c0_i32_1 = arith.constant 0 : i32
    return %c0_i32, %c0_i32_0 : i32, i32
  }
  func.func @transform_6(%arg0: i32) -> (i32, i32) {
    %c0_i32 = arith.constant 0 : i32
    %c0_i32_0 = arith.constant 0 : i32
    %c0_i32_1 = arith.constant 0 : i32
    return %c0_i32, %c0_i32_0 : i32, i32
  }
  func.func @transform_7(%arg0: i32) -> (i32, i32) {
    %c0_i32 = arith.constant 0 : i32
    %c0_i32_0 = arith.constant 0 : i32
    return %arg0, %c0_i32 : i32, i32
  }
}

</mosaic_0001>

<bundles_post_ra>
// kernel: tpu_custom_call.1
= control target key start
LH: loop header
LB: loop body
LE: loop exit
PB: predicated region body
PF: predicated region fallthrough
CT: control target
= control target key end

     0   :  { %12 = vsyncpa [#allocation3], 0  ;;  %s720_s0 = inlined_call_operand.hbm [shape: f32[16,128], index: 0, kind: input, shape index: {}]   ;;  %s721_s1 = inlined_call_operand.vmem [shape: f32[1,128], index: 1, kind: input, shape index: {}]   ;;  %s722_s2 = inlined_call_operand.vmem [shape: f32[1,128], index: 2, kind: input, shape index: {}]   ;;  %s723_s3 = inlined_call_operand.hbm [shape: bf16[128,128], index: 3, kind: input, shape index: {}]   ;;  %s724_s4 = inlined_call_operand.vmem [shape: f32[1,128], index: 4, kind: input, shape index: {}]   ;;  %s725_s5 = inlined_call_operand.hbm [shape: bf16[128,128], index: 5, kind: input, shape index: {}]   ;;  %s726_s6 = inlined_call_operand.vmem [shape: f32[1,128], index: 6, kind: input, shape index: {}]   ;;  %s727_s7 = inlined_call_operand.hbm [shape: f32[16,128], index: 7, kind: output, shape index: {}]  }
   0x1   :  { %13 = vsyncpa [#allocation6], 0 }
   0x2   :  { %14 = vsyncpa [#allocation4], 0  ;;  %s580_s24 = smov [#allocation5]   ;;  %s486_s28 = scalar_lea.hbm %s723_s3, 1024 }
   0x3   :  { %s36_s25 = sshll.u32 %s580_s24, 4  ;;  %p487_p0 = scmp.ne.s32.totalorder %s723_s3, %s486_s28  ;;  %s37_s25 = int_to_ptr.vmem [resolvable:$true] %s36_s25 }
   0x4   :  { %p490_p1 = scmp.lt.u32.totalorder %s486_s28, %s723_s3 }
   0x6   :  { %p492_p2 = pnand %p490_p1, %p487_p0 }
   0x8   :  { %495 = shalt.err (!%p492_p2)
}
   0x9   :  { %s496_s10 = scalar_lea.vmem %s37_s25, 1024  ;;  %p501_p4 = scmp.lt.s32.totalorder %s37_s25, %s37_s25 }
   0xa   :  { %p497_p3 = scmp.ne.s32.totalorder %s37_s25, %s496_s10  ;;  %p502_p5 = scmp.lt.s32.totalorder %s496_s10, %s496_s10 }
   0xc   :  { %p503_p6 = por %p502_p5, %p501_p4 }
   0xe   :  { %p504_p7 = pnand %p503_p6, %p497_p3 }
  0x10   :  { %507 = shalt.err (!%p504_p7)
}
  0x11   :  { %s581_s11 = smov 64   ;;  %s582_s12 = smov 4  }
  0x12   :  { %42 = dma.hbm_to_vmem [thread:$0]  %s723_s3, 1024, %s37_s25, [#allocation6], %s581_s11, %s581_s11, %s582_s12  }
  0x13   :  { %s583_s15 = smov [#allocation2]   ;;  %s508_s19 = scalar_lea.hbm %s720_s0, 256 }
  0x14   :  { %s20_s16 = sshll.u32 %s583_s15, 4  ;;  %p509_p8 = scmp.ne.s32.totalorder %s720_s0, %s508_s19  ;;  %s21_s16 = int_to_ptr.vmem [resolvable:$true] %s20_s16 }
  0x15   :  { %p512_p9 = scmp.lt.u32.totalorder %s508_s19, %s720_s0 }
  0x17   :  { %p514_p10 = pnand %p512_p9, %p509_p8 }
  0x19   :  { %517 = shalt.err (!%p514_p10)
}
  0x1a   :  { %s518_s24 = scalar_lea.vmem %s21_s16, 256  ;;  %p523_p12 = scmp.lt.s32.totalorder %s21_s16, %s21_s16 }
  0x1b   :  { %p519_p11 = scmp.ne.s32.totalorder %s21_s16, %s518_s24  ;;  %p524_p13 = scmp.lt.s32.totalorder %s518_s24, %s518_s24 }
  0x1d   :  { %p525_p0 = por %p524_p13, %p523_p12 }
  0x1f   :  { %p526_p1 = pnand %p525_p0, %p519_p11 }
  0x21   :  { %529 = shalt.err (!%p526_p1)
}
  0x22   :  { %s584_s3 = smov 128   ;;  %s585_s25 = smov 8  }
  0x23   :  { %26 = dma.hbm_to_vmem [thread:$0]  %s720_s0, 256, %s21_s16, [#allocation3], %s584_s3, %s584_s3, %s585_s25  }
  0x24   :  { %s586_s28 = smov [#allocation7]   ;;  %s530_s9 = scalar_lea.hbm %s725_s5, 1024 }
  0x25   :  { %s50_s29 = sshll.u32 %s586_s28, 4  ;;  %p531_p2 = scmp.ne.s32.totalorder %s725_s5, %s530_s9  ;;  %s51_s29 = int_to_ptr.vmem [resolvable:$true] %s50_s29 }
  0x26   :  { %p534_p3 = scmp.lt.u32.totalorder %s530_s9, %s725_s5 }
  0x28   :  { %p536_p4 = pnand %p534_p3, %p531_p2 }
  0x2a   :  { %539 = shalt.err (!%p536_p4)
}
  0x2b   :  { %s540_s17 = scalar_lea.vmem %s51_s29, 1024  ;;  %p545_p6 = scmp.lt.s32.totalorder %s51_s29, %s51_s29 }
  0x2c   :  { %p541_p5 = scmp.ne.s32.totalorder %s51_s29, %s540_s17  ;;  %p546_p7 = scmp.lt.s32.totalorder %s540_s17, %s540_s17 }
  0x2e   :  { %p547_p8 = por %p546_p7, %p545_p6 }
  0x30   :  { %p548_p9 = pnand %p547_p8, %p541_p5 }
  0x32   :  { %551 = shalt.err (!%p548_p9)
}
  0x33   :  { %56 = dma.hbm_to_vmem [thread:$0]  %s725_s5, 1024, %s51_s29, [#allocation6], %s581_s11, %s581_s11, %s582_s12  }
  0x34   :  { %574 = dma.done.wait [#allocation3], 256  }
  0x35   :  { %575 = vsyncadd [#allocation3], 4294967040 }
  0x36   :  { %576 = dma.done.wait [#allocation6], 2048  }
  0x37   :  { %577 = vsyncadd [#allocation6], 4294965248  ;;  %v69_v0 = vld [vmem:[#allocation2] sm:$0xff]  ;;  %v70_v1 = vld [vmem:[#allocation2 + $0x8] sm:$0xff]  ;;  %v587_v3 = vmov 0.0   ;;  %v77_v4 = vlaneseq  ;;  %vm588_vm1 = vmmov 0  }
  0x38   :  { %71 = vadd.xlane.f32.xlu0 %v69_v0  ;;  %v462_v2 = vld [vmem:[#allocation5] sm:$0xff]   ;;  %412 = vmatprep.subr.bf16.mxu0 %v587_v3  ;;  %v463_v16 = vld [vmem:[#allocation5 + $0x8] sm:$0xff]   ;;  %v464_v17 = vld [vmem:[#allocation5 + $0x10] sm:$0xff]   ;;  %s589_s20 = smov [#allocation8]  }
  0x39   :  { %432 = vmatprep.subr.bf16.mxu1 %v587_v3  ;;  %413 = vmatpush3.bf16.msra.mxu0 %v462_v2  ;;  %v78_v5 = vand.u32 127, %v77_v4  ;;  %v465_v18 = vld [vmem:[#allocation5 + $0x18] sm:$0xff]   ;;  %v466_v19 = vld [vmem:[#allocation5 + $0x20] sm:$0xff]   ;;  %v467_v20 = vld [vmem:[#allocation5 + $0x28] sm:$0xff]   ;;  %s361_s21 = sshll.u32 %s589_s20, 4  ;;  %s362_s21 = int_to_ptr.vmem [resolvable:$true] %s361_s21 }
  0x3a   :  { %414 = vmatprep.subr.bf16.mxu0 %v587_v3  ;;  %428 = vmatprep.mubr.msk.bf16.mxu0 %vm588_vm1, %v587_v3  ;;  %v468_v21 = vld [vmem:[#allocation5 + $0x30] sm:$0xff]   ;;  %v469_v22 = vld [vmem:[#allocation5 + $0x38] sm:$0xff]   ;;  %v470_v23 = vld [vmem:[#allocation7] sm:$0xff]   ;;  %s552_s22 = scalar_lea.vmem %s362_s21, 256  ;;  %p557_p11 = scmp.lt.s32.totalorder %s362_s21, %s362_s21 }
  0x3b   :  { %vm79_vm0 = vcmp.lt.s32.totalorder %v78_v5, 32  ;;  %448 = vmatprep.mubr.msk.bf16.mxu1 %vm588_vm1, %v587_v3  ;;  %433 = vmatpush3.bf16.msra.mxu1 %v470_v23  ;;  %v471_v24 = vld [vmem:[#allocation7 + $0x8] sm:$0xff]   ;;  %v374_v33 = vld [vmem:[%s721_s1] ss:$0 sm:$0xff]  ;;  %v473_v43 = vld [vmem:[#allocation7 + $0x18] sm:$0xff]   ;;  %p553_p10 = scmp.ne.s32.totalorder %s362_s21, %s552_s22  ;;  %p558_p12 = scmp.lt.s32.totalorder %s552_s22, %s552_s22 }
  0x3c   :  { %73 = vadd.xlane.f32.xlu0 %v70_v1  ;;  %434 = vmatprep.subr.bf16.mxu1 %v587_v3  ;;  %v375_v37 = vld [vmem:[%s722_s2] ss:$0 sm:$0xff]  ;;  %v474_v44 = vld [vmem:[#allocation7 + $0x20] sm:$0xff]   ;;  %v475_v45 = vld [vmem:[#allocation7 + $0x28] sm:$0xff]  }
  0x3d   :  { %415 = vmatpush3.bf16.msra.mxu0 %v463_v16  ;;  %v472_v42 = vld [vmem:[#allocation7 + $0x10] sm:$0xff]   ;;  %v477_v47 = vld [vmem:[#allocation7 + $0x38] sm:$0xff]   ;;  %p559_p13 = por %p558_p12, %p557_p11 }
  0x3e   :  { %416 = vmatprep.subr.bf16.mxu0 %v587_v3  ;;  %v476_v46 = vld [vmem:[#allocation7 + $0x30] sm:$0xff]  }
  0x3f   :  { %435 = vmatpush3.bf16.msra.mxu1 %v471_v24  ;;  %v376_v48 = vld [vmem:[%s724_s4] ss:$0 sm:$0xff]  ;;  %p560_p0 = pnand %p559_p13, %p553_p10 }
  0x40   :  { %436 = vmatprep.subr.bf16.mxu1 %v587_v3  ;;  %v385_v2 = vld [vmem:[%s726_s6] ss:$0 sm:$0xff] }
  0x41   :  { %417 = vmatpush3.bf16.msra.mxu0 %v464_v17 }
  0x42   :  { %418 = vmatprep.subr.bf16.mxu0 %v587_v3 }
  0x43   :  { %437 = vmatpush3.bf16.msra.mxu1 %v472_v42 }
  0x44   :  { %438 = vmatprep.subr.bf16.mxu1 %v587_v3 }
  0x45   :  { %419 = vmatpush3.bf16.msra.mxu0 %v465_v18 }
  0x46   :  { %420 = vmatprep.subr.bf16.mxu0 %v587_v3 }
  0x47   :  { %439 = vmatpush3.bf16.msra.mxu1 %v473_v43 }
  0x48   :  { %440 = vmatprep.subr.bf16.mxu1 %v587_v3 }
  0x49   :  { %421 = vmatpush3.bf16.msra.mxu0 %v466_v19 }
  0x4a   :  { %422 = vmatprep.subr.bf16.mxu0 %v587_v3 }
  0x4b   :  { %441 = vmatpush3.bf16.msra.mxu1 %v474_v44 }
  0x4c   :  { %442 = vmatprep.subr.bf16.mxu1 %v587_v3 }
  0x4d   :  { %423 = vmatpush3.bf16.msra.mxu0 %v467_v20 }
  0x4e   :  { %424 = vmatprep.subr.bf16.mxu0 %v587_v3 }
  0x4f   :  { %443 = vmatpush3.bf16.msra.mxu1 %v475_v45 }
  0x50   :  { %444 = vmatprep.subr.bf16.mxu1 %v587_v3 }
  0x51   :  { %425 = vmatpush3.bf16.msra.mxu0 %v468_v21 }
  0x52   :  { %426 = vmatprep.subr.bf16.mxu0 %v587_v3 }
  0x53   :  { %445 = vmatpush3.bf16.msra.mxu1 %v476_v46 }
  0x54   :  { %446 = vmatprep.subr.bf16.mxu1 %v587_v3 }
  0x55   :  { %427 = vmatpush3.bf16.msra.mxu0 %v469_v22 }
  0x57   :  { %447 = vmatpush3.bf16.msra.mxu1 %v477_v47 }
  0xc5   :  { %v72_v6 = vpop.xlane.xlu0 %71 }
  0xc6   :  { %v75_v7 = vmul.f32 0.03125, %v72_v6 }
  0xc8   :  { %v80_v8 = vsub.f32 %v69_v0, %v75_v7 }
  0xc9   :  { %v74_v9 = vpop.xlane.xlu0 %73 }
  0xca   :  { %v76_v10 = vmul.f32 0.03125, %v74_v9  ;;  %v84_v11 = vsel %vm79_vm0, %v80_v8, 0.0 }
  0xcb   :  { %v86_v12 = vmul.f32 %v84_v11, %v84_v11 }
  0xcc   :  { %v81_v13 = vsub.f32 %v70_v1, %v76_v10 }
  0xcd   :  { %88 = vadd.xlane.f32.xlu1 %v86_v12 }
  0xce   :  { %v85_v14 = vsel %vm79_vm0, %v81_v13, 0.0 }
  0xcf   :  { %v87_v15 = vmul.f32 %v85_v14, %v85_v14 }
  0xd1   :  { %90 = vadd.xlane.f32.xlu1 %v87_v15 }
 0x15a   :  { %v89_v25 = vpop.xlane.xlu1 %88 }
 0x15b   :  { %v92_v26 = vmul.f32 0.03125, %v89_v25 }
 0x15d   :  { %v94_v27 = vadd.f32 1e-05, %v92_v26 }
 0x15e   :  { %v91_v28 = vpop.xlane.xlu1 %90 }
 0x15f   :  { %478 = vrsqrt.f32 %v94_v27  ;;  %v93_v29 = vmul.f32 0.03125, %v91_v28 }
 0x161   :  { %v95_v30 = vadd.f32 1e-05, %v93_v29 }
 0x163   :  { %480 = vrsqrt.f32 %v95_v30 }
 0x169   :  { %v479_v31 = vpop.eup %478 }
 0x16a   :  { %v98_v32 = vmul.f32 %v479_v31, %v84_v11 }
 0x16c   :  { %v107_v36 = vmul.f32 %v374_v33, %v98_v32 }
 0x16d   :  { %v481_v34 = vpop.eup %480 }
 0x16e   :  { %v99_v35 = vmul.f32 %v481_v34, %v85_v14  ;;  %v116_v39 = vadd.f32 %v375_v37, %v107_v36 }
 0x170   :  { %v108_v38 = vmul.f32 %v374_v33, %v99_v35 }
 0x172   :  { %v117_v40 = vadd.f32 %v375_v37, %v108_v38 }
 0x174   :  { %v118_v41 = vpack.c.bf16 %v117_v40, %v116_v39 }
 0x176   :  { %429 = vmatmul.mubr.bf16.vlgmr.msra.gmra.mrb[0].mxu0 %v118_v41 }
 0x249   :  { %v224_v49 = vpop.f32.mrb[0].mxu0 }
 0x24a   :  { %v225_v50 = vadd.f32 %v376_v48, %v224_v49  ;;  %v430_v51 = vpop.f32.mrb[1].mxu0 }
 0x24b   :  { %v227_v52 = vpop.f32.mrb[2].mxu0 }
 0x24c   :  { %v233_v53 = vmul.f32 0.70710677, %v225_v50  ;;  %v228_v54 = vadd.f32 %v376_v48, %v227_v52  ;;  %v431_v55 = vpop.f32.mrb[3].mxu0  ;;  %v231_v60 = vmul.f32 0.5, %v225_v50 }
 0x24e   :  { %482 = verf.f32 %v233_v53  ;;  %v234_v56 = vmul.f32 0.70710677, %v228_v54  ;;  %v232_v61 = vmul.f32 0.5, %v228_v54 }
 0x250   :  { %484 = verf.f32 %v234_v56 }
 0x258   :  { %v483_v57 = vpop.eup %482 }
 0x259   :  { %v237_v58 = vadd.f32 1.0, %v483_v57 }
 0x25a   :  { %v485_v59 = vpop.eup %484 }
 0x25b   :  { %v238_v62 = vadd.f32 1.0, %v485_v59  ;;  %v239_v63 = vmul.f32 %v237_v58, %v231_v60 }
 0x25d   :  { %v240_v0 = vmul.f32 %v238_v62, %v232_v61 }
 0x25f   :  { %v241_v1 = vpack.c.bf16 %v240_v0, %v239_v63 }
 0x261   :  { %449 = vmatmul.mubr.bf16.vlgmr.msra.gmra.mrb[0].mxu1 %v241_v1 }
 0x334   :  { %v347_v3 = vpop.f32.mrb[0].mxu1 }
 0x335   :  { %v348_v4 = vadd.f32 %v385_v2, %v347_v3  ;;  %v450_v5 = vpop.f32.mrb[1].mxu1 }
 0x336   :  { %v350_v6 = vpop.f32.mrb[2].mxu1 }
 0x337   :  { %354 = vst [vmem:[#allocation8] sm:$0xff] %v348_v4  ;;  %v351_v7 = vadd.f32 %v385_v2, %v350_v6  ;;  %v451_v8 = vpop.f32.mrb[3].mxu1 }
 0x339   :  { %355 = vst [vmem:[#allocation8 + $0x8] sm:$0xff] %v351_v7 }
 0x33a   :  { %563 = shalt.err (!%p560_p0)
}
 0x33b   :  { %s564_s24 = scalar_lea.hbm %s727_s7, 256 }
 0x33c   :  { %p565_p1 = scmp.ne.s32.totalorder %s727_s7, %s564_s24  ;;  %p568_p2 = scmp.lt.u32.totalorder %s564_s24, %s727_s7 }
 0x33e   :  { %p570_p3 = pnand %p568_p2, %p565_p1 }
 0x340   :  { %573 = shalt.err (!%p570_p3)
}
 0x341   :  { %367 = dma.vmem_to_hbm [thread:$0]  %s362_s21, 256, %s727_s7, [#allocation4], %s584_s3, %s584_s3, %s585_s25  }
 0x342   :  { %578 = dma.done.wait [#allocation4], 256  }
 0x343   :  { %579 = vsyncadd [#allocation4], 4294967040 }
 0x344   :  { %371 = vsyncpa [#allocation3], 1 }
 0x345   :  { %372 = vsyncpa [#allocation6], 1 }
 0x346   :  { %373 = vsyncpa [#allocation4], 1 }

</bundles_post_ra>
